<compile_context>
chip_gen: v7x
topology: tpu7x:2x2x1
jax: 0.10.0
libtpu: 0.0.40
codegen_flags: <defaults>
</compile_context>

<pallas_src>
import functools

import numpy as np
import jax
import jax.numpy as jnp
from jax.experimental import pallas as pl
from jax.experimental.pallas import tpu as pltpu

LANES = 128      # TPU lane width (last dim of every VMEM block)
SUBLANES = 8     # f32 sublane minimum (second-to-last dim)


def _swish(h):
    # Numerically stable h * sigmoid(h) spelled with ops guaranteed to lower in
    # Mosaic (abs/exp/where/div); exp always sees a non-positive argument.
    e = jnp.exp(-jnp.abs(h))
    return jnp.where(h >= 0.0, h / (1.0 + e), h * e / (1.0 + e))


def _fused_dynamics_kernel(nd, z_ref, s_ref, rm_ref, w1qv_ref, w1s_ref, b1_ref,
                           w2_ref, b2_ref, w3_ref, b3_ref, out_ref):
    """Fused dynamics net: preprocessing + FCswish + FCswish + Linear.

    z_ref   : (bs_pad, 128)  [q_flat | p_flat | 0-pad]
    s_ref   : (bs_pad, 128)  [sysP_flat | 1-pad]
    rm_ref  : (128, 128)     0/1 matrix: sysP lanes -> mass m_i at each p lane
    w1qv_ref: (128, 128)     rows 0..2*nd-1 = row-permuted W1 (q rows, v rows)
    w1s_ref : (128, 128)     rows 0..n*sys_dim-1 = W1 rows for sysP features
    w2/w3   : (128, 128), b1/b2/b3: (1, 128), all zero-padded
    out_ref : (bs_pad, 128)  lanes 0..out_dim-1 hold the real dz/dt
    """
    z = z_ref[...]
    s = s_ref[...]

    # Per-lane divisor: 1 on q lanes / padding, m_i on the p lanes.
    m_rep = jnp.dot(s, rm_ref[...], preferred_element_type=jnp.float32)
    lane = jax.lax.broadcasted_iota(jnp.int32, m_rep.shape, 1)
    is_p = jnp.logical_and(lane >= nd, lane < 2 * nd)
    denom = jnp.where(is_p, m_rep, 1.0)
    zx = z / denom                                   # [q | p/m | 0]

    # Layer 1 (FCswish): zm @ W1 + b1, split into (q,v) and sysP contributions.
    h = (jnp.dot(zx, w1qv_ref[...], preferred_element_type=jnp.float32)
         + jnp.dot(s, w1s_ref[...], preferred_element_type=jnp.float32)
         + b1_ref[...])
    h = _swish(h)

    # Layer 2 (FCswish).
    h = jnp.dot(h, w2_ref[...], preferred_element_type=jnp.float32) + b2_ref[...]
    h = _swish(h)

    # Layer 3 (Linear) — lane-dense (8, 128) unmasked store.
    out_ref[...] = (jnp.dot(h, w3_ref[...], preferred_element_type=jnp.float32)
                    + b3_ref[...])


@functools.partial(jax.jit, static_argnames=("n", "d", "sys_dim"))
def _fused_forward(z, sysP, params, *, n, d, sys_dim):
    bs = z.shape[0]
    nd = n * d
    out_dim = 2 * nd
    bs_pad = max(SUBLANES, -(-bs // SUBLANES) * SUBLANES)

    s_flat = sysP.reshape(bs, n * sys_dim)
    # Zero-pad the state; one-pad sysP (padded rows/lanes only ever hit zero
    # weight rows, and the 1.0 keeps the per-lane divisor away from 1/0 on the
    # padded batch rows).
    z_p = jnp.pad(z, ((0, bs_pad - bs), (0, LANES - z.shape[1])))
    s_p = jnp.pad(s_flat, ((0, bs_pad - bs), (0, LANES - s_flat.shape[1])),
                  constant_values=1.0)

    kernel = functools.partial(_fused_dynamics_kernel, nd)
    out_p = pl.pallas_call(
        kernel,
        out_shape=jax.ShapeDtypeStruct((bs_pad, LANES), jnp.float32),
        # Grid-less call: one kernel instance, whole operands in VMEM.
        in_specs=[pl.BlockSpec(memory_space=pltpu.MemorySpace.VMEM)] * 10,
        out_specs=pl.BlockSpec(memory_space=pltpu.MemorySpace.VMEM),
    )(z_p, s_p, *params)
    return out_p[:bs, :out_dim]


def _linear_init(key, fan_in, fan_out):
    kw, kb = jax.random.split(key)
    bound = 1.0 / float(np.sqrt(fan_in))
    w = jax.random.uniform(kw, (fan_in, fan_out), jnp.float32, -bound, bound)
    b = jax.random.uniform(kb, (1, fan_out), jnp.float32, -bound, bound)
    return w, b


def _pad2d(x, rows, cols):
    return jnp.pad(x, ((0, rows - x.shape[0]), (0, cols - x.shape[1])))


class FCDynamics:
    """dz/dt = net(cat(q, p/m, sysP)); the whole forward runs in one Pallas kernel."""

    def __init__(self, key, n=6, d=2, sys_dim=2, k=32):
        assert k <= LANES and n * (2 * d + sys_dim) <= LANES and 2 * d * n <= LANES
        self.nfe = 0
        self.n, self.d, self.sys_dim, self.k = n, d, sys_dim, k
        width = 2 * d + sys_dim
        in_dim = n * width
        out_dim = 2 * d * n
        k1, k2, k3 = jax.random.split(key, 3)
        # Reference-layout parameters (PyTorch nn.Linear-style uniform init).
        self.w1, self.b1 = _linear_init(k1, in_dim, k)
        self.w2, self.b2 = _linear_init(k2, k, k)
        self.w3, self.b3 = _linear_init(k3, k, out_dim)

        # ---- kernel-layout parameters, built once (amortized over nfe calls) ----
        nd, nsd = n * d, n * sys_dim
        # Row permutation of W1 so the kernel can consume [q_flat | p/m_flat]
        # and sysP_flat directly instead of the per-particle interleaved zm.
        q_idx = np.array([i * width + j for i in range(n) for j in range(d)])
        v_idx = np.array([i * width + d + j for i in range(n) for j in range(d)])
        s_idx = np.array([i * width + 2 * d + j
                          for i in range(n) for j in range(sys_dim)])
        w1qv = jnp.concatenate([self.w1[q_idx], self.w1[v_idx]], axis=0)  # (2nd, k)
        w1s = self.w1[s_idx]                                              # (nsd, k)
        # Constant 0/1 matrix mapping sysP lanes to mass m_i at every p lane.
        rm = np.zeros((nsd, 2 * nd), np.float32)
        for i in range(n):
            for j in range(d):
                rm[i * sys_dim, nd + i * d + j] = 1.0
        self.params = (
            _pad2d(jnp.asarray(rm), LANES, LANES),
            _pad2d(w1qv, LANES, LANES),
            _pad2d(w1s, LANES, LANES),
            _pad2d(self.b1, 1, LANES),
            _pad2d(self.w2, LANES, LANES),
            _pad2d(self.b2, 1, LANES),
            _pad2d(self.w3, LANES, LANES),
            _pad2d(self.b3, 1, LANES),
        )

    def __call__(self, t, z, sysP, wgrad=True):
        del t, wgrad   # signature parity with the reference FC model; unused here
        return _fused_forward(z, sysP, self.params,
                              n=self.n, d=self.d, sys_dim=self.sys_dim)


class Partial:
    """Exact semantics of lie_conv.dynamicsTrainer.Partial.forward:
    increments module.nfe and calls module(*x, *args, **kwargs)."""
    # TODO(synk): nfe is a host-side Python counter; it will not tick per solver
    # step if this wrapper is later traced inside jit/odeint (same caveat as the
    # original under torch.jit).

    def __init__(self, module, *args, **kwargs):
        self.module = module
        self.args = args
        self.kwargs = kwargs

    def __call__(self, *x):
        self.module.nfe += 1
        return self.module(*x, *self.args, **self.kwargs)


def _reference_forward(model, z, sysP):
    """Pure-JAX reference with the original interleaved zm layout."""
    bs = z.shape[0]
    m = sysP[..., 0]
    D = z.shape[-1]
    q = z[:, :D // 2].reshape(bs, model.n, model.d)
    p = z[:, D // 2:].reshape(bs, model.n, model.d)
    zm = jnp.concatenate((q, p / m[..., None], sysP), axis=-1).reshape(bs, -1)
    hp = jax.lax.Precision.HIGHEST
    h = jnp.dot(zm, model.w1, precision=hp) + model.b1
    h = h * jax.nn.sigmoid(h)
    h = jnp.dot(h, model.w2, precision=hp) + model.b2
    h = h * jax.nn.sigmoid(h)
    return jnp.dot(h, model.w3, precision=hp) + model.b3


if __name__ == "__main__":
    bs, n, d, sys_dim, k_hidden = 2, 6, 2, 2, 32

    key = jax.random.PRNGKey(0)
    k_model, k_z, k_p = jax.random.split(key, 3)

    model = FCDynamics(k_model, n=n, d=d, sys_dim=sys_dim, k=k_hidden)

    z = jax.random.normal(k_z, (bs, 2 * n * d), jnp.float32)           # state
    sysP = jax.random.uniform(k_p, (bs, n, sys_dim), jnp.float32,
                              minval=0.5, maxval=1.5)                   # sys params
    t = jnp.zeros((), jnp.float32)

    # Partial binds sysP / wgrad, exactly as done before handing to odeint.
    dynamics = Partial(model, sysP=sysP, wgrad=False)

    out = dynamics(t, z)
    out = jax.block_until_ready(out)

    assert out.shape == (bs, 2 * n * d), out.shape
    assert out.dtype == jnp.float32
    assert model.nfe == 1   # Partial's side effect

    ref = jax.block_until_ready(_reference_forward(model, z, sysP))
    assert jnp.allclose(out, ref, rtol=1e-3, atol=1e-3), \
        float(jnp.max(jnp.abs(out - ref)))

    print("KERNEL_OK")
</pallas_src>

<mosaic_0001>
module attributes {stable_mosaic.version = 11 : i64} {
  func.func @_fused_dynamics_kernel(%arg0: memref<8x128xf32, #tpu.memory_space<vmem>>, %arg1: memref<8x128xf32, #tpu.memory_space<vmem>>, %arg2: memref<128x128xf32, #tpu.memory_space<vmem>>, %arg3: memref<128x128xf32, #tpu.memory_space<vmem>>, %arg4: memref<128x128xf32, #tpu.memory_space<vmem>>, %arg5: memref<1x128xf32, #tpu.memory_space<vmem>>, %arg6: memref<128x128xf32, #tpu.memory_space<vmem>>, %arg7: memref<1x128xf32, #tpu.memory_space<vmem>>, %arg8: memref<128x128xf32, #tpu.memory_space<vmem>>, %arg9: memref<1x128xf32, #tpu.memory_space<vmem>>, %arg10: memref<8x128xf32, #tpu.memory_space<vmem>>) attributes {dimension_semantics = [], scalar_prefetch = 0 : i64, scratch_operands = 0 : i64, tpu.core_type = #tpu.core_type<tc>} {
    %c0 = arith.constant 0 : index
    %c0_0 = arith.constant 0 : index
    %0 = vector.load %arg0[%c0, %c0_0] : memref<8x128xf32, #tpu.memory_space<vmem>>, vector<8x128xf32>
    %c0_1 = arith.constant 0 : index
    %c0_2 = arith.constant 0 : index
    %1 = vector.load %arg1[%c0_1, %c0_2] : memref<8x128xf32, #tpu.memory_space<vmem>>, vector<8x128xf32>
    %c0_3 = arith.constant 0 : index
    %c0_4 = arith.constant 0 : index
    %2 = vector.load %arg2[%c0_3, %c0_4] : memref<128x128xf32, #tpu.memory_space<vmem>>, vector<128x128xf32>
    %cst = arith.constant dense<0.000000e+00> : vector<8x128xf32>
    %3 = tpu.matmul %1, %2, %cst {dimension_numbers = #tpu.dot_dimension_numbers<[1], [0], [0], [1], [0, 0, 1, 1], [], []>} : vector<8x128xf32>, vector<128x128xf32>, vector<8x128xf32> -> vector<8x128xf32>
    %4 = tpu.iota {dimensions = array<i32: 1>} : vector<8x128xi32>
    %c12_i32 = arith.constant 12 : i32
    %5 = vector.broadcast %c12_i32 : i32 to vector<8x128xi32>
    %6 = arith.cmpi sge, %4, %5 : vector<8x128xi32>
    %c24_i32 = arith.constant 24 : i32
    %7 = vector.broadcast %c24_i32 : i32 to vector<8x128xi32>
    %8 = arith.cmpi slt, %4, %7 : vector<8x128xi32>
    %9 = arith.andi %6, %8 : vector<8x128xi1>
    %cst_5 = arith.constant 1.000000e+00 : f32
    %10 = vector.broadcast %cst_5 : f32 to vector<8x128xf32>
    %11 = arith.select %9, %3, %10 : vector<8x128xi1>, vector<8x128xf32>
    %12 = arith.divf %0, %11 : vector<8x128xf32>
    %c0_6 = arith.constant 0 : index
    %c0_7 = arith.constant 0 : index
    %13 = vector.load %arg3[%c0_6, %c0_7] : memref<128x128xf32, #tpu.memory_space<vmem>>, vector<128x128xf32>
    %cst_8 = arith.constant dense<0.000000e+00> : vector<8x128xf32>
    %14 = tpu.matmul %12, %13, %cst_8 {dimension_numbers = #tpu.dot_dimension_numbers<[1], [0], [0], [1], [0, 0, 1, 1], [], []>} : vector<8x128xf32>, vector<128x128xf32>, vector<8x128xf32> -> vector<8x128xf32>
    %c0_9 = arith.constant 0 : index
    %c0_10 = arith.constant 0 : index
    %15 = vector.load %arg4[%c0_9, %c0_10] : memref<128x128xf32, #tpu.memory_space<vmem>>, vector<128x128xf32>
    %cst_11 = arith.constant dense<0.000000e+00> : vector<8x128xf32>
    %16 = tpu.matmul %1, %15, %cst_11 {dimension_numbers = #tpu.dot_dimension_numbers<[1], [0], [0], [1], [0, 0, 1, 1], [], []>} : vector<8x128xf32>, vector<128x128xf32>, vector<8x128xf32> -> vector<8x128xf32>
    %17 = arith.addf %14, %16 : vector<8x128xf32>
    %c0_12 = arith.constant 0 : index
    %c0_13 = arith.constant 0 : index
    %18 = vector.load %arg5[%c0_12, %c0_13] : memref<1x128xf32, #tpu.memory_space<vmem>>, vector<1x128xf32>
    %19 = vector.broadcast %18 : vector<1x128xf32> to vector<8x128xf32>
    %20 = arith.addf %17, %19 : vector<8x128xf32>
    %21 = math.absf %20 : vector<8x128xf32>
    %cst_14 = arith.constant 0.000000e+00 : f32
    %22 = vector.broadcast %cst_14 : f32 to vector<8x128xf32>
    %23 = arith.subf %22, %21 : vector<8x128xf32>
    %24 = math.exp %23 : vector<8x128xf32>
    %cst_15 = arith.constant 0.000000e+00 : f32
    %25 = vector.broadcast %cst_15 : f32 to vector<8x128xf32>
    %26 = arith.cmpf oge, %20, %25 : vector<8x128xf32>
    %cst_16 = arith.constant 1.000000e+00 : f32
    %27 = vector.broadcast %cst_16 : f32 to vector<8x128xf32>
    %28 = arith.addf %27, %24 : vector<8x128xf32>
    %29 = arith.divf %20, %28 : vector<8x128xf32>
    %30 = arith.mulf %20, %24 : vector<8x128xf32>
    %cst_17 = arith.constant 1.000000e+00 : f32
    %31 = vector.broadcast %cst_17 : f32 to vector<8x128xf32>
    %32 = arith.addf %31, %24 : vector<8x128xf32>
    %33 = arith.divf %30, %32 : vector<8x128xf32>
    %34 = arith.select %26, %29, %33 : vector<8x128xi1>, vector<8x128xf32>
    %c0_18 = arith.constant 0 : index
    %c0_19 = arith.constant 0 : index
    %35 = vector.load %arg6[%c0_18, %c0_19] : memref<128x128xf32, #tpu.memory_space<vmem>>, vector<128x128xf32>
    %cst_20 = arith.constant dense<0.000000e+00> : vector<8x128xf32>
    %36 = tpu.matmul %34, %35, %cst_20 {dimension_numbers = #tpu.dot_dimension_numbers<[1], [0], [0], [1], [0, 0, 1, 1], [], []>} : vector<8x128xf32>, vector<128x128xf32>, vector<8x128xf32> -> vector<8x128xf32>
    %c0_21 = arith.constant 0 : index
    %c0_22 = arith.constant 0 : index
    %37 = vector.load %arg7[%c0_21, %c0_22] : memref<1x128xf32, #tpu.memory_space<vmem>>, vector<1x128xf32>
    %38 = vector.broadcast %37 : vector<1x128xf32> to vector<8x128xf32>
    %39 = arith.addf %36, %38 : vector<8x128xf32>
    %40 = math.absf %39 : vector<8x128xf32>
    %cst_23 = arith.constant 0.000000e+00 : f32
    %41 = vector.broadcast %cst_23 : f32 to vector<8x128xf32>
    %42 = arith.subf %41, %40 : vector<8x128xf32>
    %43 = math.exp %42 : vector<8x128xf32>
    %cst_24 = arith.constant 0.000000e+00 : f32
    %44 = vector.broadcast %cst_24 : f32 to vector<8x128xf32>
    %45 = arith.cmpf oge, %39, %44 : vector<8x128xf32>
    %cst_25 = arith.constant 1.000000e+00 : f32
    %46 = vector.broadcast %cst_25 : f32 to vector<8x128xf32>
    %47 = arith.addf %46, %43 : vector<8x128xf32>
    %48 = arith.divf %39, %47 : vector<8x128xf32>
    %49 = arith.mulf %39, %43 : vector<8x128xf32>
    %cst_26 = arith.constant 1.000000e+00 : f32
    %50 = vector.broadcast %cst_26 : f32 to vector<8x128xf32>
    %51 = arith.addf %50, %43 : vector<8x128xf32>
    %52 = arith.divf %49, %51 : vector<8x128xf32>
    %53 = arith.select %45, %48, %52 : vector<8x128xi1>, vector<8x128xf32>
    %c0_27 = arith.constant 0 : index
    %c0_28 = arith.constant 0 : index
    %54 = vector.load %arg8[%c0_27, %c0_28] : memref<128x128xf32, #tpu.memory_space<vmem>>, vector<128x128xf32>
    %cst_29 = arith.constant dense<0.000000e+00> : vector<8x128xf32>
    %55 = tpu.matmul %53, %54, %cst_29 {dimension_numbers = #tpu.dot_dimension_numbers<[1], [0], [0], [1], [0, 0, 1, 1], [], []>} : vector<8x128xf32>, vector<128x128xf32>, vector<8x128xf32> -> vector<8x128xf32>
    %c0_30 = arith.constant 0 : index
    %c0_31 = arith.constant 0 : index
    %56 = vector.load %arg9[%c0_30, %c0_31] : memref<1x128xf32, #tpu.memory_space<vmem>>, vector<1x128xf32>
    %57 = vector.broadcast %56 : vector<1x128xf32> to vector<8x128xf32>
    %58 = arith.addf %55, %57 : vector<8x128xf32>
    %c0_32 = arith.constant 0 : index
    %c0_33 = arith.constant 0 : index
    %59 = vector.load %arg10[%c0_32, %c0_33] : memref<8x128xf32, #tpu.memory_space<vmem>>, vector<8x128xf32>
    tpu.vector_store %arg10[%c0_32, %c0_33], %58 {strides = array<i32>} : memref<8x128xf32, #tpu.memory_space<vmem>>, vector<8x128xf32>,
    return
  }
}

</mosaic_0001>

<bundles_post_ra>
// kernel: _fused_forward.1
= control target key start
LH: loop header
LB: loop body
LE: loop exit
PB: predicated region body
PF: predicated region fallthrough
CT: control target
= control target key end

     0   :  { %15 = vsyncpa [#allocation3], 0  ;;  %s1336_s0 = inlined_call_operand.vmem [shape: f32[8,128], index: 0, kind: input, shape index: {}]   ;;  %s1337_s1 = inlined_call_operand.vmem [shape: f32[8,128], index: 1, kind: input, shape index: {}]   ;;  %s1338_s2 = inlined_call_operand.hbm [shape: f32[128,128], index: 2, kind: input, shape index: {}]   ;;  %s1339_s3 = inlined_call_operand.hbm [shape: f32[128,128], index: 3, kind: input, shape index: {}]   ;;  %s1340_s4 = inlined_call_operand.hbm [shape: f32[128,128], index: 4, kind: input, shape index: {}]   ;;  %s1341_s5 = inlined_call_operand.vmem [shape: f32[1,128], index: 5, kind: input, shape index: {}]   ;;  %s1342_s6 = inlined_call_operand.hbm [shape: f32[128,128], index: 6, kind: input, shape index: {}]   ;;  %s1343_s7 = inlined_call_operand.vmem [shape: f32[1,128], index: 7, kind: input, shape index: {}]   ;;  %s1344_s8 = inlined_call_operand.hbm [shape: f32[128,128], index: 8, kind: input, shape index: {}]   ;;  %s1345_s9 = inlined_call_operand.vmem [shape: f32[1,128], index: 9, kind: input, shape index: {}]   ;;  %s1346_s10 = inlined_call_operand.vmem [shape: f32[8,128], index: 10, kind: output, shape index: {}]  }
   0x1   :  { %16 = vsyncpa [#allocation5], 0 }
   0x2   :  { %17 = vsyncpa [#allocation8], 0  ;;  %s1114_s13 = smov [#allocation4]   ;;  %s1115_s15 = smov [#allocation7]  }
   0x3   :  { %s39_s14 = sshll.u32 %s1114_s13, 4  ;;  %s65_s16 = sshll.u32 %s1115_s15, 4  ;;  %s40_s14 = int_to_ptr.vmem [resolvable:$true] %s39_s14  ;;  %s1179_s16 = int_to_ptr.vmem [resolvable:$true] %s65_s16 }
   0x4   :  { %s998_s19 = scalar_lea.hbm %s1339_s3, 2048 }
   0x5   :  { %p999_p0 = scmp.ne.s32.totalorder %s1339_s3, %s998_s19  ;;  %p1002_p1 = scmp.lt.u32.totalorder %s998_s19, %s1339_s3 }
   0x7   :  { %p1004_p2 = pnand %p1002_p1, %p999_p0 }
   0x9   :  { %1007 = shalt.err (!%p1004_p2)
}
   0xa   :  { %s1008_s24 = scalar_lea.vmem %s40_s14, 2048  ;;  %p1013_p4 = scmp.lt.s32.totalorder %s40_s14, %s40_s14 }
   0xb   :  { %p1009_p3 = scmp.ne.s32.totalorder %s40_s14, %s1008_s24  ;;  %p1014_p5 = scmp.lt.s32.totalorder %s1008_s24, %s1008_s24 }
   0xd   :  { %p1015_p6 = por %p1014_p5, %p1013_p4 }
   0xf   :  { %p1016_p7 = pnand %p1015_p6, %p1009_p3 }
  0x11   :  { %1019 = shalt.err (!%p1016_p7)
}
  0x12   :  { %s1116_s25 = smov 128   ;;  %s1117_s26 = smov 8  }
  0x13   :  { %45 = dma.hbm_to_vmem [thread:$0]  %s1339_s3, 2048, %s40_s14, [#allocation5], %s1116_s25, %s1116_s25, %s1117_s26  }
  0x14   :  { %s1020_s11 = scalar_lea.hbm %s1342_s6, 2048 }
  0x15   :  { %p1021_p8 = scmp.ne.s32.totalorder %s1342_s6, %s1020_s11  ;;  %p1024_p9 = scmp.lt.u32.totalorder %s1020_s11, %s1342_s6 }
  0x17   :  { %p1026_p10 = pnand %p1024_p9, %p1021_p8 }
  0x19   :  { %1029 = shalt.err (!%p1026_p10)
}
  0x1a   :  { %s1030_s18 = scalar_lea.vmem %s1179_s16, 2048  ;;  %p1035_p12 = scmp.lt.s32.totalorder %s1179_s16, %s1179_s16 }
  0x1b   :  { %p1031_p11 = scmp.ne.s32.totalorder %s1179_s16, %s1030_s18  ;;  %p1036_p13 = scmp.lt.s32.totalorder %s1030_s18, %s1030_s18 }
  0x1d   :  { %p1037_p0 = por %p1036_p13, %p1035_p12 }
  0x1f   :  { %p1038_p1 = pnand %p1037_p0, %p1031_p11 }
  0x21   :  { %1041 = shalt.err (!%p1038_p1)
}
  0x22   :  { %71 = dma.hbm_to_vmem [thread:$0]  %s1342_s6, 2048, %s1179_s16, [#allocation8], %s1116_s25, %s1116_s25, %s1117_s26  }
  0x23   :  { %s1118_s19 = smov [#allocation2]   ;;  %s1119_s21 = smov [#allocation6]  }
  0x24   :  { %s27_s20 = sshll.u32 %s1118_s19, 4  ;;  %s51_s22 = sshll.u32 %s1119_s21, 4  ;;  %s28_s20 = int_to_ptr.vmem [resolvable:$true] %s27_s20  ;;  %s1216_s22 = int_to_ptr.vmem [resolvable:$true] %s51_s22 }
  0x25   :  { %s1042_s27 = scalar_lea.hbm %s1338_s2, 2048 }
  0x26   :  { %p1043_p2 = scmp.ne.s32.totalorder %s1338_s2, %s1042_s27  ;;  %p1046_p3 = scmp.lt.u32.totalorder %s1042_s27, %s1338_s2 }
  0x28   :  { %p1048_p4 = pnand %p1046_p3, %p1043_p2 }
  0x2a   :  { %1051 = shalt.err (!%p1048_p4)
}
  0x2b   :  { %s1052_s6 = scalar_lea.vmem %s28_s20, 2048  ;;  %p1057_p6 = scmp.lt.s32.totalorder %s28_s20, %s28_s20 }
  0x2c   :  { %p1053_p5 = scmp.ne.s32.totalorder %s28_s20, %s1052_s6  ;;  %p1058_p7 = scmp.lt.s32.totalorder %s1052_s6, %s1052_s6 }
  0x2e   :  { %p1059_p8 = por %p1058_p7, %p1057_p6 }
  0x30   :  { %p1060_p9 = pnand %p1059_p8, %p1053_p5 }
  0x32   :  { %1063 = shalt.err (!%p1060_p9)
}
  0x33   :  { %33 = dma.hbm_to_vmem [thread:$0]  %s1338_s2, 2048, %s28_s20, [#allocation3], %s1116_s25, %s1116_s25, %s1117_s26  }
  0x34   :  { %s1064_s17 = scalar_lea.hbm %s1340_s4, 2048 }
  0x35   :  { %p1065_p10 = scmp.ne.s32.totalorder %s1340_s4, %s1064_s17  ;;  %p1068_p11 = scmp.lt.u32.totalorder %s1064_s17, %s1340_s4 }
  0x37   :  { %p1070_p12 = pnand %p1068_p11, %p1065_p10 }
  0x39   :  { %1073 = shalt.err (!%p1070_p12)
}
  0x3a   :  { %s1074_s21 = scalar_lea.vmem %s1216_s22, 2048  ;;  %p1079_p0 = scmp.lt.s32.totalorder %s1216_s22, %s1216_s22 }
  0x3b   :  { %p1075_p13 = scmp.ne.s32.totalorder %s1216_s22, %s1074_s21  ;;  %p1080_p1 = scmp.lt.s32.totalorder %s1074_s21, %s1074_s21 }
  0x3d   :  { %p1081_p2 = por %p1080_p1, %p1079_p0 }
  0x3f   :  { %p1082_p3 = pnand %p1081_p2, %p1075_p13 }
  0x41   :  { %1085 = shalt.err (!%p1082_p3)
}
  0x42   :  { %57 = dma.hbm_to_vmem [thread:$0]  %s1340_s4, 2048, %s1216_s22, [#allocation5], %s1116_s25, %s1116_s25, %s1117_s26  }
  0x43   :  { %s1120_s23 = smov [#allocation9]   ;;  %s1086_s29 = scalar_lea.hbm %s1344_s8, 2048 }
  0x44   :  { %s79_s24 = sshll.u32 %s1120_s23, 4  ;;  %p1087_p4 = scmp.ne.s32.totalorder %s1344_s8, %s1086_s29  ;;  %s80_s24 = int_to_ptr.vmem [resolvable:$true] %s79_s24 }
  0x45   :  { %p1090_p5 = scmp.lt.u32.totalorder %s1086_s29, %s1344_s8 }
  0x47   :  { %p1092_p6 = pnand %p1090_p5, %p1087_p4 }
  0x49   :  { %1095 = shalt.err (!%p1092_p6)
}
  0x4a   :  { %s1096_s12 = scalar_lea.vmem %s80_s24, 2048  ;;  %p1101_p8 = scmp.lt.s32.totalorder %s80_s24, %s80_s24 }
  0x4b   :  { %p1097_p7 = scmp.ne.s32.totalorder %s80_s24, %s1096_s12  ;;  %p1102_p9 = scmp.lt.s32.totalorder %s1096_s12, %s1096_s12 }
  0x4d   :  { %p1103_p10 = por %p1102_p9, %p1101_p8 }
  0x4f   :  { %p1104_p11 = pnand %p1103_p10, %p1097_p7 }
  0x51   :  { %1107 = shalt.err (!%p1104_p11)
}
  0x52   :  { %85 = dma.hbm_to_vmem [thread:$0]  %s1344_s8, 2048, %s80_s24, [#allocation8], %s1116_s25, %s1116_s25, %s1117_s26  }
  0x53   :  { %1108 = dma.done.wait [#allocation3], 2048  }
  0x54   :  { %1109 = vsyncadd [#allocation3], 4294965248 }
  0x55   :  { %1110 = dma.done.wait [#allocation5], 4096  }
  0x56   :  { %1111 = vsyncadd [#allocation5], 4294963200 }
  0x57   :  { %1112 = dma.done.wait [#allocation8], 4096  }
  0x58   :  { %1113 = vsyncadd [#allocation8], 4294963200  ;;  %v1121_v0 = vmov 0.0|0.0   ;;  %vm1122_vm0 = vmmov 0   ;;  %v1123_v1 = vmov 0.0   ;;  %v105_v2 = vld [vmem:[#allocation2] sm:$0xff] }
  0x59   :  { %858 = vmatprep.subr.bf16.mxu0 %v1121_v0  ;;  %715 = vmatprep.mubr.msk.f32.mxu0 %vm1122_vm0, %v1123_v1  ;;  %v106_v3 = vld [vmem:[#allocation2 + $0x8] sm:$0xff]  ;;  %v107_v4 = vld [vmem:[#allocation2 + $0x10] sm:$0xff]  ;;  %v108_v6 = vld [vmem:[#allocation2 + $0x18] sm:$0xff] }
  0x5a   :  { %882 = vmatprep.subr.bf16.mxu1 %v1121_v0  ;;  %750 = vmatprep.mubr.msk.f32.mxu1 %vm1122_vm0, %v1123_v1  ;;  %v859_v5 = vpack.c.bf16 %v106_v3, %v105_v2  ;;  %v862_v7 = vpack.c.bf16 %v108_v6, %v107_v4  ;;  %v109_v8 = vld [vmem:[#allocation2 + $0x20] sm:$0xff]  ;;  %v110_v9 = vld [vmem:[#allocation2 + $0x28] sm:$0xff]  ;;  %v217_v14 = vld [vmem:[#allocation6 + $0x10] sm:$0xff] }
  0x5b   :  { %v215_v10 = vld [vmem:[#allocation6] sm:$0xff]  ;;  %v216_v11 = vld [vmem:[#allocation6 + $0x8] sm:$0xff]  ;;  %v865_v12 = vpack.c.bf16 %v110_v9, %v109_v8  ;;  %v218_v15 = vld [vmem:[#allocation6 + $0x18] sm:$0xff] }
  0x5c   :  { %860 = vmatpush3.bf16.msra.mxu0 %v859_v5  ;;  %v883_v13 = vpack.c.bf16 %v216_v11, %v215_v10  ;;  %v111_v16 = vld [vmem:[#allocation2 + $0x30] sm:$0xff]  ;;  %v112_v17 = vld [vmem:[#allocation2 + $0x38] sm:$0xff]  ;;  %v886_v18 = vpack.c.bf16 %v218_v15, %v217_v14  ;;  %v219_v19 = vld [vmem:[#allocation6 + $0x20] sm:$0xff] }
  0x5d   :  { %861 = vmatprep.subr.bf16.mxu0 %v1121_v0  ;;  %v220_v20 = vld [vmem:[#allocation6 + $0x28] sm:$0xff]  ;;  %v868_v21 = vpack.c.bf16 %v112_v17, %v111_v16  ;;  %v113_v22 = vld [vmem:[#allocation2 + $0x40] sm:$0xff]  ;;  %v221_v25 = vld [vmem:[#allocation6 + $0x30] sm:$0xff] }
  0x5e   :  { %884 = vmatpush3.bf16.msra.mxu1 %v883_v13  ;;  %v114_v23 = vld [vmem:[#allocation2 + $0x48] sm:$0xff]  ;;  %v889_v24 = vpack.c.bf16 %v220_v20, %v219_v19  ;;  %v222_v26 = vld [vmem:[#allocation6 + $0x38] sm:$0xff]  ;;  %v115_v28 = vld [vmem:[#allocation2 + $0x50] sm:$0xff]  ;;  %v191_v13 = vlaneseq }
  0x5f   :  { %885 = vmatprep.subr.bf16.mxu1 %v1121_v0  ;;  %v871_v27 = vpack.c.bf16 %v114_v23, %v113_v22  ;;  %v116_v29 = vld [vmem:[#allocation2 + $0x58] sm:$0xff]  ;;  %v892_v30 = vpack.c.bf16 %v222_v26, %v221_v25  ;;  %v223_v31 = vld [vmem:[#allocation6 + $0x40] sm:$0xff]  ;;  %v224_v32 = vld [vmem:[#allocation6 + $0x48] sm:$0xff] }
  0x60   :  { %863 = vmatpush3.bf16.msra.mxu0 %v862_v7  ;;  %v874_v33 = vpack.c.bf16 %v116_v29, %v115_v28  ;;  %v117_v34 = vld [vmem:[#allocation2 + $0x60] sm:$0xff]  ;;  %v118_v35 = vld [vmem:[#allocation2 + $0x68] sm:$0xff]  ;;  %v895_v36 = vpack.c.bf16 %v224_v32, %v223_v31  ;;  %v119_v38 = vld [vmem:[#allocation2 + $0x70] sm:$0xff]  ;;  %v192_v14 = vand.u32 127, %v191_v13 }
  0x61   :  { %864 = vmatprep.subr.bf16.mxu0 %v1121_v0  ;;  %v877_v37 = vpack.c.bf16 %v118_v35, %v117_v34  ;;  %v120_v39 = vld [vmem:[#allocation2 + $0x78] sm:$0xff]  ;;  %v199_v41 = vld [vmem:[#allocation4] sm:$0xff]  ;;  %v200_v42 = vld [vmem:[#allocation4 + $0x8] sm:$0xff] }
  0x62   :  { %887 = vmatpush3.bf16.msra.mxu1 %v886_v18  ;;  %v880_v40 = vpack.c.bf16 %v120_v39, %v119_v38  ;;  %v104_v43 = vld [vmem:[%s1337_s1] sm:$0xff]  ;;  %v907_v44 = vpack.c.bf16 %v200_v42, %v199_v41  ;;  %v201_v45 = vld [vmem:[#allocation4 + $0x10] sm:$0xff]  ;;  %v202_v46 = vld [vmem:[#allocation4 + $0x18] sm:$0xff]  ;;  %vm193_vm1 = vcmp.ge.s32.totalorder %v192_v14, 12  ;;  %vm194_vm2 = vcmp.lt.s32.totalorder %v192_v14, 24 }
  0x63   :  { %888 = vmatprep.subr.bf16.mxu1 %v1121_v0  ;;  %v910_v47 = vpack.c.bf16 %v202_v46, %v201_v45  ;;  %v203_v48 = vld [vmem:[#allocation4 + $0x20] sm:$0xff]  ;;  %v204_v49 = vld [vmem:[#allocation4 + $0x28] sm:$0xff]  ;;  %v205_v51 = vld [vmem:[#allocation4 + $0x30] sm:$0xff] }
  0x64   :  { %866 = vmatpush3.bf16.msra.mxu0 %v865_v12  ;;  %v913_v50 = vpack.c.bf16 %v204_v49, %v203_v48  ;;  %v206_v52 = vld [vmem:[#allocation4 + $0x38] sm:$0xff]  ;;  %v207_v54 = vld [vmem:[#allocation4 + $0x40] sm:$0xff]  ;;  %v208_v55 = vld [vmem:[#allocation4 + $0x48] sm:$0xff] }
  0x65   :  { %867 = vmatprep.subr.bf16.mxu0 %v1121_v0  ;;  %v916_v53 = vpack.c.bf16 %v206_v52, %v205_v51  ;;  %v919_v56 = vpack.c.bf16 %v208_v55, %v207_v54  ;;  %v225_v57 = vld [vmem:[#allocation6 + $0x50] sm:$0xff]  ;;  %v226_v58 = vld [vmem:[#allocation6 + $0x58] sm:$0xff]  ;;  %v227_v63 = vld [vmem:[#allocation6 + $0x60] sm:$0xff] }
  0x66   :  { %890 = vmatpush3.bf16.msra.mxu1 %v889_v24  ;;  %v898_v59 = vpack.c.bf16 %v226_v58, %v225_v57  ;;  %v209_v60 = vld [vmem:[#allocation4 + $0x50] sm:$0xff]  ;;  %v210_v61 = vld [vmem:[#allocation4 + $0x58] sm:$0xff]  ;;  %v228_v2 = vld [vmem:[#allocation6 + $0x68] sm:$0xff] }
  0x67   :  { %891 = vmatprep.subr.bf16.mxu1 %v1121_v0  ;;  %v922_v62 = vpack.c.bf16 %v210_v61, %v209_v60  ;;  %v211_v3 = vld [vmem:[#allocation4 + $0x60] sm:$0xff]  ;;  %v901_v4 = vpack.c.bf16 %v228_v2, %v227_v63  ;;  %v212_v5 = vld [vmem:[#allocation4 + $0x68] sm:$0xff]  ;;  %v229_v7 = vld [vmem:[#allocation6 + $0x70] sm:$0xff] }
  0x68   :  { %869 = vmatpush3.bf16.msra.mxu0 %v868_v21  ;;  %v925_v6 = vpack.c.bf16 %v212_v5, %v211_v3  ;;  %v230_v8 = vld [vmem:[#allocation6 + $0x78] sm:$0xff]  ;;  %v213_v9 = vld [vmem:[#allocation4 + $0x70] sm:$0xff]  ;;  %vm195_vm3 = vmand %vm193_vm1, %vm194_vm2 }
  0x69   :  { %870 = vmatprep.subr.bf16.mxu0 %v1121_v0  ;;  %v214_v10 = vld [vmem:[#allocation4 + $0x78] sm:$0xff]  ;;  %v904_v11 = vpack.c.bf16 %v230_v8, %v229_v7  ;;  %v103_v18 = vld [vmem:[%s1336_s0] sm:$0xff]  ;;  %v391_v24 = vld [vmem:[#allocation7 + $0x8] sm:$0xff] }
  0x6a   :  { %893 = vmatpush3.bf16.msra.mxu1 %v892_v30  ;;  %v928_v12 = vpack.c.bf16 %v214_v10, %v213_v9  ;;  %v390_v23 = vld [vmem:[#allocation7] sm:$0xff]  ;;  %v392_v26 = vld [vmem:[#allocation7 + $0x10] sm:$0xff]  ;;  %v395_v30 = vld [vmem:[#allocation7 + $0x28] sm:$0xff] }
  0x6b   :  { %894 = vmatprep.subr.bf16.mxu1 %v1121_v0  ;;  %v931_v25 = vpack.c.bf16 %v391_v24, %v390_v23  ;;  %v394_v29 = vld [vmem:[#allocation7 + $0x20] sm:$0xff]  ;;  %v396_v32 = vld [vmem:[#allocation7 + $0x30] sm:$0xff]  ;;  %v399_v35 = vld [vmem:[#allocation7 + $0x48] sm:$0xff] }
  0x6c   :  { %872 = vmatpush3.bf16.msra.mxu0 %v871_v27  ;;  %v393_v27 = vld [vmem:[#allocation7 + $0x18] sm:$0xff]  ;;  %v937_v31 = vpack.c.bf16 %v395_v30, %v394_v29  ;;  %v398_v34 = vld [vmem:[#allocation7 + $0x40] sm:$0xff]  ;;  %v403_v41 = vld [vmem:[#allocation7 + $0x68] sm:$0xff] }
  0x6d   :  { %873 = vmatprep.subr.bf16.mxu0 %v1121_v0  ;;  %v934_v28 = vpack.c.bf16 %v393_v27, %v392_v26  ;;  %v401_v38 = vld [vmem:[#allocation7 + $0x58] sm:$0xff]  ;;  %v494_v61 = vld [vmem:[#allocation9] sm:$0xff]  ;;  %v496_v2 = vld [vmem:[#allocation9 + $0x10] sm:$0xff] }
  0x6e   :  { %896 = vmatpush3.bf16.msra.mxu1 %v895_v36  ;;  %v943_v36 = vpack.c.bf16 %v399_v35, %v398_v34  ;;  %v497_v3 = vld [vmem:[#allocation9 + $0x18] sm:$0xff]  ;;  %v498_v5 = vld [vmem:[#allocation9 + $0x20] sm:$0xff]  ;;  %v500_v8 = vld [vmem:[#allocation9 + $0x30] sm:$0xff] }
  0x6f   :  { %897 = vmatprep.subr.bf16.mxu1 %v1121_v0  ;;  %v501_v9 = vld [vmem:[#allocation9 + $0x38] sm:$0xff]  ;;  %v504_v14 = vld [vmem:[#allocation9 + $0x50] sm:$0xff]  ;;  %v596_v23 = vld [vmem:[%s1343_s7] ss:$0 sm:$0xff] }
  0x70   :  { %875 = vmatpush3.bf16.msra.mxu0 %v874_v33  ;;  %v397_v33 = vld [vmem:[#allocation7 + $0x38] sm:$0xff]  ;;  %v964_v10 = vpack.c.bf16 %v501_v9, %v500_v8  ;;  %v597_v35 = vld [vmem:[%s1345_s9] ss:$0 sm:$0xff] }
  0x71   :  { %876 = vmatprep.subr.bf16.mxu0 %v1121_v0 }
  0x72   :  { %899 = vmatpush3.bf16.msra.mxu1 %v898_v59 }
  0x73   :  { %900 = vmatprep.subr.bf16.mxu1 %v1121_v0 }
  0x74   :  { %878 = vmatpush3.bf16.msra.mxu0 %v877_v37  ;;  %v400_v37 = vld [vmem:[#allocation7 + $0x50] sm:$0xff] }
  0x75   :  { %879 = vmatprep.subr.bf16.mxu0 %v1121_v0  ;;  %v946_v39 = vpack.c.bf16 %v401_v38, %v400_v37 }
  0x76   :  { %902 = vmatpush3.bf16.msra.mxu1 %v901_v4  ;;  %v958_v4 = vpack.c.bf16 %v497_v3, %v496_v2 }
  0x77   :  { %903 = vmatprep.subr.bf16.mxu1 %v1121_v0 }
  0x78   :  { %881 = vmatpush3.bf16.msra.mxu0 %v880_v40  ;;  %v402_v40 = vld [vmem:[#allocation7 + $0x60] sm:$0xff] }
  0x79   :  { %906 = vmatprep.subr.bf16.mxu0 %v1121_v0  ;;  %v949_v42 = vpack.c.bf16 %v403_v41, %v402_v40 }
  0x7a   :  { %905 = vmatpush3.bf16.msra.mxu1 %v904_v11  ;;  %v502_v11 = vld [vmem:[#allocation9 + $0x40] sm:$0xff] }
  0x7b   :  { %716 = vmatmul.mubr.f32.vlgmr.msra.gmra.mrb[0].mxu0 %v104_v43  ;;  %930 = vmatprep.subr.bf16.mxu1 %v1121_v0 }
  0x7c   :  { %908 = vmatpush3.bf16.msra.mxu0 %v907_v44  ;;  %785 = vmatprep.mubr.msk.f32.mxu0 %vm1122_vm0, %v1123_v1  ;;  %v405_v44 = vld [vmem:[#allocation7 + $0x78] sm:$0xff] }
  0x7d   :  { %909 = vmatprep.subr.bf16.mxu0 %v1121_v0  ;;  %751 = vmatmul.mubr.f32.vlgmr.msra.gmra.mrb[0].mxu1 %v104_v43  ;;  %v404_v43 = vld [vmem:[#allocation7 + $0x70] sm:$0xff] }
  0x7e   :  { %820 = vmatprep.mubr.msk.f32.mxu1 %vm1122_vm0, %v1123_v1  ;;  %932 = vmatpush3.bf16.msra.mxu1 %v931_v25  ;;  %v952_v45 = vpack.c.bf16 %v405_v44, %v404_v43 }
  0x7f   :  { %933 = vmatprep.subr.bf16.mxu1 %v1121_v0 }
  0x80   :  { %911 = vmatpush3.bf16.msra.mxu0 %v910_v47  ;;  %v595_v47 = vld [vmem:[%s1341_s5] ss:$0 sm:$0xff] }
  0x81   :  { %912 = vmatprep.subr.bf16.mxu0 %v1121_v0 }
  0x82   :  { %935 = vmatpush3.bf16.msra.mxu1 %v934_v28 }
  0x83   :  { %936 = vmatprep.subr.bf16.mxu1 %v1121_v0 }
  0x84   :  { %914 = vmatpush3.bf16.msra.mxu0 %v913_v50 }
  0x85   :  { %915 = vmatprep.subr.bf16.mxu0 %v1121_v0 }
  0x86   :  { %938 = vmatpush3.bf16.msra.mxu1 %v937_v31 }
  0x87   :  { %939 = vmatprep.subr.bf16.mxu1 %v1121_v0 }
  0x88   :  { %917 = vmatpush3.bf16.msra.mxu0 %v916_v53 }
  0x89   :  { %918 = vmatprep.subr.bf16.mxu0 %v1121_v0 }
  0x8c   :  { %920 = vmatpush3.bf16.msra.mxu0 %v919_v56 }
  0x8d   :  { %921 = vmatprep.subr.bf16.mxu0 %v1121_v0 }
  0x90   :  { %923 = vmatpush3.bf16.msra.mxu0 %v922_v62  ;;  %v495_v62 = vld [vmem:[#allocation9 + $0x8] sm:$0xff] }
  0x91   :  { %924 = vmatprep.subr.bf16.mxu0 %v1121_v0  ;;  %v955_v63 = vpack.c.bf16 %v495_v62, %v494_v61 }
  0x94   :  { %926 = vmatpush3.bf16.msra.mxu0 %v925_v6  ;;  %v499_v6 = vld [vmem:[#allocation9 + $0x28] sm:$0xff] }
  0x95   :  { %927 = vmatprep.subr.bf16.mxu0 %v1121_v0  ;;  %v961_v7 = vpack.c.bf16 %v499_v6, %v498_v5 }
  0x98   :  { %929 = vmatpush3.bf16.msra.mxu0 %v928_v12  ;;  %v503_v12 = vld [vmem:[#allocation9 + $0x48] sm:$0xff] }
  0x99   :  { %954 = vmatprep.subr.bf16.mxu0 %v1121_v0  ;;  %v967_v13 = vpack.c.bf16 %v503_v12, %v502_v11 }
 0x14e   :  { %v187_v15 = vpop.f32.mrb[0].mxu0 }
 0x14f   :  { %v196_v16 = vsel %vm195_vm3, %v187_v15, 1.0  ;;  %v717_v17 = vpop.f32.mrb[1].mxu0  ;;  %v505_v15 = vld [vmem:[#allocation9 + $0x58] sm:$0xff] }
 0x150   :  { %988 = vrcp.f32 %v196_v16  ;;  %v297_v21 = vpop.f32.mrb[0].mxu1  ;;  %v970_v16 = vpack.c.bf16 %v505_v15, %v504_v14  ;;  %v506_v17 = vld [vmem:[#allocation9 + $0x60] sm:$0xff] }
 0x151   :  { %v752_v22 = vpop.f32.mrb[1].mxu1 }
 0x15a   :  { %v989_v19 = vpop.eup %988 }
 0x15b   :  { %v198_v20 = vmul.f32 %v989_v19, %v103_v18  ;;  %v507_v18 = vld [vmem:[#allocation9 + $0x68] sm:$0xff] }
 0x15c   :  { %v973_v19 = vpack.c.bf16 %v507_v18, %v506_v17 }
 0x15d   :  { %786 = vmatmul.mubr.f32.vlgmr.msra.gmra.mrb[2].mxu0 %v198_v20  ;;  %v508_v20 = vld [vmem:[#allocation9 + $0x70] sm:$0xff] }
 0x15e   :  { %855 = vmatprep.mubr.msk.f32.mxu0 %vm1122_vm0, %v1123_v1  ;;  %v940_v1 = vpack.c.bf16 %v397_v33, %v396_v32  ;;  %956 = vmatpush3.bf16.msra.mxu0 %v955_v63 }
 0x15f   :  { %957 = vmatprep.subr.bf16.mxu0 %v1121_v0 }
 0x160   :  { %941 = vmatpush3.bf16.msra.mxu1 %v940_v1 }
 0x161   :  { %942 = vmatprep.subr.bf16.mxu1 %v1121_v0 }
 0x162   :  { %959 = vmatpush3.bf16.msra.mxu0 %v958_v4 }
 0x163   :  { %960 = vmatprep.subr.bf16.mxu0 %v1121_v0 }
 0x164   :  { %944 = vmatpush3.bf16.msra.mxu1 %v943_v36 }
 0x165   :  { %945 = vmatprep.subr.bf16.mxu1 %v1121_v0 }
 0x166   :  { %962 = vmatpush3.bf16.msra.mxu0 %v961_v7 }
 0x167   :  { %963 = vmatprep.subr.bf16.mxu0 %v1121_v0 }
 0x168   :  { %947 = vmatpush3.bf16.msra.mxu1 %v946_v39 }
 0x169   :  { %948 = vmatprep.subr.bf16.mxu1 %v1121_v0 }
 0x16a   :  { %965 = vmatpush3.bf16.msra.mxu0 %v964_v10 }
 0x16b   :  { %966 = vmatprep.subr.bf16.mxu0 %v1121_v0 }
 0x16c   :  { %950 = vmatpush3.bf16.msra.mxu1 %v949_v42 }
 0x16d   :  { %951 = vmatprep.subr.bf16.mxu1 %v1121_v0 }
 0x16e   :  { %968 = vmatpush3.bf16.msra.mxu0 %v967_v13 }
 0x16f   :  { %969 = vmatprep.subr.bf16.mxu0 %v1121_v0 }
 0x170   :  { %953 = vmatpush3.bf16.msra.mxu1 %v952_v45 }
 0x172   :  { %971 = vmatpush3.bf16.msra.mxu0 %v970_v16 }
 0x173   :  { %972 = vmatprep.subr.bf16.mxu0 %v1121_v0 }
 0x176   :  { %974 = vmatpush3.bf16.msra.mxu0 %v973_v19 }
 0x177   :  { %975 = vmatprep.subr.bf16.mxu0 %v1121_v0 }
 0x230   :  { %v367_v46 = vpop.f32.mrb[2].mxu0 }
 0x231   :  { %v368_v48 = vadd.f32 %v367_v46, %v297_v21  ;;  %v787_v49 = vpop.f32.mrb[3].mxu0  ;;  %v509_v21 = vld [vmem:[#allocation9 + $0x78] sm:$0xff] }
 0x232   :  { %v976_v22 = vpack.c.bf16 %v509_v21, %v508_v20 }
 0x233   :  { %v378_v50 = vadd.f32 %v595_v47, %v368_v48 }
 0x234   :  { %977 = vmatpush3.bf16.msra.mxu0 %v976_v22 }
 0x235   :  { %v379_v51 = vand.u32 2147483647, %v378_v50  ;;  %vm383_vm4 = vcmp.ge.f32.partialorder %v378_v50, 0.0 }
 0x237   :  { %v380_v52 = vsub.f32 0.0, %v379_v51 }
 0x239   :  { %v381_v53 = vmul.f32 1.442695, %v380_v52 }
 0x23b   :  { %990 = vpow2.f32 %v381_v53 }
 0x245   :  { %v991_v54 = vpop.eup %990 }
 0x246   :  { %v384_v55 = vadd.f32 1.0, %v991_v54  ;;  %v387_v56 = vmul.f32 %v991_v54, %v378_v50 }
 0x248   :  { %992 = vrcp.f32 %v384_v55 }
 0x252   :  { %v993_v57 = vpop.eup %992 }
 0x253   :  { %v386_v58 = vmul.f32 %v993_v57, %v378_v50  ;;  %v388_v59 = vmul.f32 %v993_v57, %v387_v56 }
 0x255   :  { %v389_v60 = vsel %vm383_vm4, %v386_v58, %v388_v59 }
 0x256   :  { %821 = vmatmul.mubr.f32.vlgmr.msra.gmra.mrb[2].mxu1 %v389_v60 }
 0x329   :  { %v479_v24 = vpop.f32.mrb[2].mxu1 }
 0x32a   :  { %v480_v25 = vadd.f32 %v596_v23, %v479_v24  ;;  %v822_v26 = vpop.f32.mrb[3].mxu1 }
 0x32c   :  { %v483_v27 = vand.u32 2147483647, %v480_v25  ;;  %vm487_vm5 = vcmp.ge.f32.partialorder %v480_v25, 0.0 }
 0x32e   :  { %v484_v28 = vsub.f32 0.0, %v483_v27 }
 0x330   :  { %v485_v29 = vmul.f32 1.442695, %v484_v28 }
 0x332   :  { %994 = vpow2.f32 %v485_v29 }
 0x33c   :  { %v995_v30 = vpop.eup %994 }
 0x33d   :  { %v488_v31 = vadd.f32 1.0, %v995_v30  ;;  %v491_v32 = vmul.f32 %v995_v30, %v480_v25 }
 0x33f   :  { %996 = vrcp.f32 %v488_v31 }
 0x349   :  { %v997_v33 = vpop.eup %996 }
 0x34a   :  { %v490_v1 = vmul.f32 %v997_v33, %v480_v25  ;;  %v492_v34 = vmul.f32 %v997_v33, %v491_v32 }
 0x34c   :  { %v493_v0 = vsel %vm487_vm5, %v490_v1, %v492_v34 }
 0x34d   :  { %856 = vmatmul.mubr.f32.vlgmr.msra.gmra.mrb[4].mxu0 %v493_v0 }
 0x420   :  { %v583_v36 = vpop.f32.mrb[4].mxu0 }
 0x421   :  { %v584_v37 = vadd.f32 %v597_v35, %v583_v36  ;;  %v857_v38 = vpop.f32.mrb[5].mxu0 }
 0x423   :  { %587 = vst [vmem:[%s1346_s10] sm:$0xff] %v584_v37 }
 0x424   :  { %592 = vsyncpa [#allocation3], 1 }
 0x425   :  { %593 = vsyncpa [#allocation5], 1 }
 0x426   :  { %594 = vsyncpa [#allocation8], 1 }

</bundles_post_ra>
